<compile_context>
chip_gen: v7x
topology: tpu7x:2x2x1
jax: 0.10.0
libtpu: 0.0.40
codegen_flags: <defaults>
</compile_context>

<pallas_src>
import functools

import jax
import jax.numpy as jnp
from jax import lax
from jax.experimental import pallas as pl
from jax.experimental.pallas import tpu as pltpu

CLIP_EPS = 0.2          # PolicyLoss(clip_eps=0.2)
IGNORE_INDEX = -100     # nn.CrossEntropyLoss default


def _vmem_limit_bytes():
    """Per-generation scoped VMEM limit with headroom (3/4 of physical)."""
    cap = 64 * 1024 * 1024
    try:
        info = pltpu.get_tpu_info()
        cap = int(getattr(info, "vmem_capacity_bytes", cap))
    except Exception:
        pass
    return int(max(32 * 1024 * 1024, min(96 * 1024 * 1024, (cap * 3) // 4)))


# --------------------------- PPO policy loss kernel ---------------------------
def _policy_kernel(lp_ref, olp_ref, adv_ref, out_ref, *, tile_b, total_rows,
                   clip_eps):
    i = pl.program_id(0)

    @pl.when(i == 0)
    def _init():
        out_ref[...] = jnp.zeros_like(out_ref)

    lp = lp_ref[...].astype(jnp.float32)
    olp = olp_ref[...].astype(jnp.float32)
    adv = adv_ref[...].astype(jnp.float32)
    ratio = jnp.exp(lp - olp)
    surr1 = ratio * adv
    surr2 = jnp.clip(ratio, 1.0 - clip_eps, 1.0 + clip_eps) * adv
    loss = -jnp.minimum(surr1, surr2)

    # Mask the ragged tail of the last row-tile (garbage rows -> exactly 0;
    # select semantics so NaN/Inf from garbage never propagate).
    row = i * tile_b + lax.broadcasted_iota(jnp.int32, loss.shape, 0)
    loss = jnp.where(row < total_rows, loss, 0.0)

    # Elementwise resident accumulator: pure VPU adds, no per-step reduce.
    out_ref[...] += loss


def policy_loss(log_probs, old_log_probs, advantages, clip_eps=CLIP_EPS,
                tile_bytes=2 * 1024 * 1024):
    """PolicyLoss forward, action_mask=None branch (plain loss.mean())."""
    # TODO(synk): action_mask / token_level_mean branches not implemented.
    n = log_probs.size
    if log_probs.ndim == 1:
        shape2d = (1, log_probs.shape[0])
    else:
        shape2d = (-1, log_probs.shape[-1])
    # Contiguous reshape = free view; no padded HBM copy of the inputs.
    args = [a.reshape(shape2d) for a in (log_probs, old_log_probs, advantages)]
    rows, width = args[0].shape

    # ~tile_bytes of f32 work per input per grid step (1-4 MiB range).
    tile_b = max(8, (tile_bytes // max(width * 4, 1)) // 8 * 8)
    if tile_b >= rows:
        tile_b = rows           # full-extent block (legal for any row count)
        num_tiles = 1
    else:
        num_tiles = pl.cdiv(rows, tile_b)

    kernel = functools.partial(_policy_kernel, tile_b=tile_b, total_rows=rows,
                               clip_eps=clip_eps)
    out = pl.pallas_call(
        kernel,
        out_shape=jax.ShapeDtypeStruct((tile_b, width), jnp.float32),
        grid=(num_tiles,),
        in_specs=[pl.BlockSpec((tile_b, width), lambda i: (i, 0))] * 3,
        out_specs=pl.BlockSpec((tile_b, width), lambda i: (0, 0)),
        compiler_params=pltpu.CompilerParams(
            dimension_semantics=("arbitrary",),
            vmem_limit_bytes=_vmem_limit_bytes()),
    )(*args)
    # Single cross-lane/sublane reduce, once, in JAX.
    return jnp.sum(out) * (1.0 / n)


# --------------------------- GPT LM cross-entropy kernel ----------------------
def _lm_ce_kernel(logits_ref, labels_ref, out_ref, *, ignore_index):
    @pl.when(pl.program_id(0) == 0)
    def _init():
        out_ref[...] = jnp.zeros_like(out_ref)

    x = logits_ref[...]                            # (tile_rows, V) native dtype
    lbl = labels_ref[...]                          # (tile_rows, 1) int32

    # max / shift / label-pick in the native dtype (bf16 VPU on v6e/v7x);
    # only the exp and the log-sum are done in f32.
    m = jnp.max(x, axis=-1, keepdims=True)
    shifted = x - m
    col = lax.broadcasted_iota(jnp.int32, x.shape, 1)
    sumexp = jnp.sum(jnp.exp(shifted.astype(jnp.float32)), axis=-1,
                     keepdims=True)
    picked = jnp.sum(jnp.where(col == lbl, shifted, jnp.zeros_like(shifted)),
                     axis=-1, keepdims=True).astype(jnp.float32)
    nll = jnp.log(sumexp) - picked                 # row max cancels exactly

    # Padded / shifted-out / ignored rows carry ignore_index labels, so a
    # single select drops them (garbage logits rows in a ragged last tile
    # included).
    valid = lbl != ignore_index
    out_ref[...] += jnp.where(valid, nll, 0.0)     # per-row resident partials


def gpt_lm_loss(lm_logits, lm_input_ids, ignore_index=IGNORE_INDEX,
                budget_bytes=None):
    B, S, V = lm_logits.shape
    total_rows = B * S
    itemsize = jnp.dtype(lm_logits.dtype).itemsize

    # Free contiguous reshape (bitcast) -- no HBM copy of the logits, and the
    # :-1 sequence shift lives entirely in the tiny int32 label tensor below.
    logits2d = lm_logits.reshape(total_rows, V)
    labels = jnp.concatenate(
        [lm_input_ids[:, 1:].astype(jnp.int32),
         jnp.full((B, 1), ignore_index, dtype=jnp.int32)],
        axis=1).reshape(total_rows)

    vmem_limit = _vmem_limit_bytes()
    if budget_bytes is None:
        # Size the tile off the f32 COMPUTE footprint (tile_rows * V * 4),
        # so bf16 inputs don't understate the in-kernel working set.
        budget_bytes = (8 * 1024 * 1024 if vmem_limit >= 64 * 1024 * 1024
                        else 4 * 1024 * 1024)
    tile_rows = max(8, (budget_bytes // max(V * 4, 1)) // 8 * 8)
    tile_rows = min(tile_rows, 2048)   # keep lane-padded (rows,1) buffers small
    if tile_rows >= total_rows:
        tile_rows = total_rows
        num_tiles = 1
    else:
        num_tiles = pl.cdiv(total_rows, tile_rows)

    rows_pad = num_tiles * tile_rows
    if rows_pad > total_rows:
        labels = jnp.pad(labels, (0, rows_pad - total_rows),
                         constant_values=ignore_index)
    labels2d = labels.reshape(rows_pad, 1)

    kernel = functools.partial(_lm_ce_kernel, ignore_index=ignore_index)
    cost = pl.CostEstimate(
        flops=6 * total_rows * V,
        transcendentals=total_rows * V,
        bytes_accessed=total_rows * V * itemsize + rows_pad * 4 + tile_rows * 4)

    out = pl.pallas_call(
        kernel,
        out_shape=jax.ShapeDtypeStruct((tile_rows, 1), jnp.float32),
        grid=(num_tiles,),
        in_specs=[
            pl.BlockSpec((tile_rows, V), lambda i: (i, 0)),
            pl.BlockSpec((tile_rows, 1), lambda i: (i, 0)),
        ],
        out_specs=pl.BlockSpec((tile_rows, 1), lambda i: (0, 0)),
        compiler_params=pltpu.CompilerParams(
            dimension_semantics=("arbitrary",),
            vmem_limit_bytes=vmem_limit),
        cost_estimate=cost,
    )(logits2d, labels2d)

    valid_count = jnp.maximum(jnp.sum(labels != ignore_index), 1)
    return jnp.sum(out) / valid_count.astype(jnp.float32)


# --------------------------- PPOPtxActorLoss forward --------------------------
def ppo_ptx_actor_loss(log_probs, old_log_probs, advantages,
                       lm_logits, lm_input_ids, pretrain_coef=0.0,
                       action_mask=None, policy_clip_eps=CLIP_EPS):
    if action_mask is not None:
        # TODO(synk): masked_mean / token_level_mean path not implemented.
        raise NotImplementedError("action_mask path not implemented")
    p_loss = policy_loss(log_probs, old_log_probs, advantages,
                         clip_eps=policy_clip_eps)
    lm_loss = gpt_lm_loss(lm_logits, lm_input_ids)
    return p_loss + pretrain_coef * lm_loss


# --------------------------- pure-JAX reference (sanity) ----------------------
def _reference(log_probs, old_log_probs, advantages, lm_logits, lm_input_ids,
               coef):
    ratio = jnp.exp(log_probs - old_log_probs)
    surr1 = ratio * advantages
    surr2 = jnp.clip(ratio, 1.0 - CLIP_EPS, 1.0 + CLIP_EPS) * advantages
    ploss = jnp.mean(-jnp.minimum(surr1, surr2))
    sl = lm_logits[:, :-1, :].reshape(-1, lm_logits.shape[-1]).astype(jnp.float32)
    sy = lm_input_ids[:, 1:].reshape(-1)
    logz = jax.nn.logsumexp(sl, axis=-1)
    picked = jnp.take_along_axis(sl, jnp.clip(sy, 0, None)[:, None], axis=-1)[:, 0]
    nll = logz - picked
    valid = sy != IGNORE_INDEX
    ce = jnp.sum(jnp.where(valid, nll, 0.0)) / jnp.maximum(jnp.sum(valid), 1)
    return ploss + coef * ce


if __name__ == "__main__":
    key = jax.random.PRNGKey(0)
    k1, k2, k3, k4, k5 = jax.random.split(key, 5)

    # ---- test 1: standard small shapes (single tile per kernel) ----
    B, T = 4, 128          # policy: batch x action-length
    S, V = 9, 256          # LM: seq 9 -> 8 shifted tokens per row, vocab 256

    log_probs = jax.random.normal(k1, (B, T), dtype=jnp.float32) * 0.1
    old_log_probs = jax.random.normal(k2, (B, T), dtype=jnp.float32) * 0.1
    advantages = jax.random.normal(k3, (B, T), dtype=jnp.float32)
    lm_logits = jax.random.normal(k4, (B, S, V), dtype=jnp.float32)
    lm_input_ids = jax.random.randint(k5, (B, S), 0, V, dtype=jnp.int32)

    coef = 0.5  # exercise the LM path (module default is 0.0)
    total = ppo_ptx_actor_loss(log_probs, old_log_probs, advantages,
                               lm_logits, lm_input_ids, pretrain_coef=coef)
    total = jax.block_until_ready(total)
    ref = _reference(log_probs, old_log_probs, advantages,
                     lm_logits, lm_input_ids, coef)
    assert jnp.allclose(total, ref, rtol=1e-5, atol=1e-5), (total, ref)

    # ---- test 2: ragged multi-tile path (forced small tiles, overhanging
    #              last blocks masked in-kernel) ----
    k6, k7, k8, k9, k10 = jax.random.split(jax.random.PRNGKey(1), 5)
    B2, T2 = 20, 96
    S2, V2 = 7, 512
    lp2 = jax.random.normal(k6, (B2, T2), dtype=jnp.float32) * 0.1
    olp2 = jax.random.normal(k7, (B2, T2), dtype=jnp.float32) * 0.1
    adv2 = jax.random.normal(k8, (B2, T2), dtype=jnp.float32)
    logits2 = jax.random.normal(k9, (3, S2, V2), dtype=jnp.float32)
    ids2 = jax.random.randint(k10, (3, S2), 0, V2, dtype=jnp.int32)

    p2 = policy_loss(lp2, olp2, adv2, tile_bytes=4 * 1024)        # 3 row tiles
    ce2 = gpt_lm_loss(logits2, ids2, budget_bytes=16 * 1024)      # 3 row tiles
    got2 = jax.block_until_ready(p2 + coef * ce2)
    ref2 = _reference(lp2, olp2, adv2, logits2, ids2, coef)
    assert jnp.allclose(got2, ref2, rtol=1e-5, atol=1e-5), (got2, ref2)

    print("KERNEL_OK")
</pallas_src>

<mosaic_0001>
module attributes {stable_mosaic.version = 11 : i64} {
  func.func @_policy_kernel(%arg0: i32, %arg1: memref<4x128xf32, #tpu.memory_space<vmem>>, %arg2: memref<4x128xf32, #tpu.memory_space<vmem>>, %arg3: memref<4x128xf32, #tpu.memory_space<vmem>>, %arg4: memref<4x128xf32, #tpu.memory_space<vmem>>) attributes {dimension_semantics = [#tpu.dimension_semantics<arbitrary>], iteration_bounds = array<i64: 1>, scalar_prefetch = 0 : i64, scratch_operands = 0 : i64, tpu.core_type = #tpu.core_type<tc>, window_params = [{transform_indices = @transform_0, window_bounds = array<i64: 4, 128>}, {transform_indices = @transform_1, window_bounds = array<i64: 4, 128>}, {transform_indices = @transform_2, window_bounds = array<i64: 4, 128>}, {pipeline_mode = #tpu.pipeline_mode<synchronous>, transform_indices = @transform_3, window_bounds = array<i64: 4, 128>}]} {
    %c0_i32 = arith.constant 0 : i32
    %0 = arith.cmpi eq, %arg0, %c0_i32 : i32
    %1 = arith.extui %0 : i1 to i32
    %c0_i32_0 = arith.constant 0 : i32
    %2 = arith.cmpi ne, %1, %c0_i32_0 : i32
    scf.if %2 {
      %cst_14 = arith.constant 0.000000e+00 : f32
      %28 = vector.broadcast %cst_14 : f32 to vector<4x128xf32>
      %c0_15 = arith.constant 0 : index
      %c0_16 = arith.constant 0 : index
      %29 = vector.load %arg4[%c0_15, %c0_16] : memref<4x128xf32, #tpu.memory_space<vmem>>, vector<4x128xf32>
      tpu.vector_store %arg4[%c0_15, %c0_16], %28 {strides = array<i32>} : memref<4x128xf32, #tpu.memory_space<vmem>>, vector<4x128xf32>,
    } else {
    }
    %c0 = arith.constant 0 : index
    %c0_1 = arith.constant 0 : index
    %3 = vector.load %arg1[%c0, %c0_1] : memref<4x128xf32, #tpu.memory_space<vmem>>, vector<4x128xf32>
    %c0_2 = arith.constant 0 : index
    %c0_3 = arith.constant 0 : index
    %4 = vector.load %arg2[%c0_2, %c0_3] : memref<4x128xf32, #tpu.memory_space<vmem>>, vector<4x128xf32>
    %c0_4 = arith.constant 0 : index
    %c0_5 = arith.constant 0 : index
    %5 = vector.load %arg3[%c0_4, %c0_5] : memref<4x128xf32, #tpu.memory_space<vmem>>, vector<4x128xf32>
    %6 = arith.subf %3, %4 : vector<4x128xf32>
    %7 = math.exp %6 : vector<4x128xf32>
    %8 = arith.mulf %7, %5 : vector<4x128xf32>
    %cst = arith.constant 8.000000e-01 : f32
    %cst_6 = arith.constant 1.200000e+00 : f32
    %9 = vector.broadcast %cst : f32 to vector<4x128xf32>
    %10 = arith.maximumf %9, %7 : vector<4x128xf32>
    %11 = vector.broadcast %cst_6 : f32 to vector<4x128xf32>
    %12 = arith.minimumf %11, %10 : vector<4x128xf32>
    %13 = arith.mulf %12, %5 : vector<4x128xf32>
    %14 = arith.minimumf %8, %13 : vector<4x128xf32>
    %cst_7 = arith.constant 0.000000e+00 : f32
    %15 = vector.broadcast %cst_7 : f32 to vector<4x128xf32>
    %16 = arith.subf %15, %14 : vector<4x128xf32>
    %c4_i32 = arith.constant 4 : i32
    %17 = arith.muli %arg0, %c4_i32 : i32
    %18 = tpu.iota {dimensions = array<i32: 0>} : vector<4x128xi32>
    %19 = vector.broadcast %17 : i32 to vector<4x128xi32>
    %20 = arith.addi %19, %18 : vector<4x128xi32>
    %c4_i32_8 = arith.constant 4 : i32
    %21 = vector.broadcast %c4_i32_8 : i32 to vector<4x128xi32>
    %22 = arith.cmpi slt, %20, %21 : vector<4x128xi32>
    %cst_9 = arith.constant 0.000000e+00 : f32
    %23 = vector.broadcast %cst_9 : f32 to vector<4x128xf32>
    %24 = arith.select %22, %16, %23 : vector<4x128xi1>, vector<4x128xf32>
    %c0_10 = arith.constant 0 : index
    %c0_11 = arith.constant 0 : index
    %25 = vector.load %arg4[%c0_10, %c0_11] : memref<4x128xf32, #tpu.memory_space<vmem>>, vector<4x128xf32>
    %26 = arith.addf %25, %24 : vector<4x128xf32>
    %c0_12 = arith.constant 0 : index
    %c0_13 = arith.constant 0 : index
    %27 = vector.load %arg4[%c0_12, %c0_13] : memref<4x128xf32, #tpu.memory_space<vmem>>, vector<4x128xf32>
    tpu.vector_store %arg4[%c0_12, %c0_13], %26 {strides = array<i32>} : memref<4x128xf32, #tpu.memory_space<vmem>>, vector<4x128xf32>,
    return
  }
  func.func @transform_0(%arg0: i32) -> (i32, i32) {
    %c0_i32 = arith.constant 0 : i32
    %c0_i32_0 = arith.constant 0 : i32
    return %arg0, %c0_i32 : i32, i32
  }
  func.func @transform_1(%arg0: i32) -> (i32, i32) {
    %c0_i32 = arith.constant 0 : i32
    %c0_i32_0 = arith.constant 0 : i32
    return %arg0, %c0_i32 : i32, i32
  }
  func.func @transform_2(%arg0: i32) -> (i32, i32) {
    %c0_i32 = arith.constant 0 : i32
    %c0_i32_0 = arith.constant 0 : i32
    return %arg0, %c0_i32 : i32, i32
  }
  func.func @transform_3(%arg0: i32) -> (i32, i32) {
    %c0_i32 = arith.constant 0 : i32
    %c0_i32_0 = arith.constant 0 : i32
    %c0_i32_1 = arith.constant 0 : i32
    return %c0_i32, %c0_i32_0 : i32, i32
  }
}

</mosaic_0001>

<bundles_post_ra>
// kernel: tpu_custom_call.1
= control target key start
LH: loop header
LB: loop body
LE: loop exit
PB: predicated region body
PF: predicated region fallthrough
CT: control target
= control target key end

     0   :  { %8 = vsyncpa [#allocation3], 0  ;;  %s223_s0 = inlined_call_operand.hbm [shape: f32[4,128], index: 0, kind: input, shape index: {}]   ;;  %s224_s1 = inlined_call_operand.hbm [shape: f32[4,128], index: 1, kind: input, shape index: {}]   ;;  %s225_s2 = inlined_call_operand.vmem [shape: f32[4,128], index: 2, kind: input, shape index: {}]   ;;  %s226_s3 = inlined_call_operand.hbm [shape: f32[4,128], index: 3, kind: output, shape index: {}]  }
   0x1   :  { %9 = vsyncpa [#allocation6], 0 }
   0x2   :  { %10 = vsyncpa [#allocation4], 0  ;;  %s160_s12 = smov [#allocation2]   ;;  %s161_s14 = smov [#allocation5]  }
   0x3   :  { %s17_s13 = sshll.u32 %s160_s12, 4  ;;  %s27_s15 = sshll.u32 %s161_s14, 4  ;;  %s18_s13 = int_to_ptr.vmem [resolvable:$true] %s17_s13  ;;  %s28_s15 = int_to_ptr.vmem [resolvable:$true] %s27_s15 }
   0x4   :  { %s88_s18 = scalar_lea.hbm %s223_s0, 64 }
   0x5   :  { %p89_p0 = scmp.ne.s32.totalorder %s223_s0, %s88_s18  ;;  %p92_p1 = scmp.lt.u32.totalorder %s88_s18, %s223_s0 }
   0x7   :  { %p94_p2 = pnand %p92_p1, %p89_p0 }
   0x9   :  { %97 = shalt.err (!%p94_p2)
}
   0xa   :  { %s98_s23 = scalar_lea.vmem %s18_s13, 64  ;;  %p103_p4 = scmp.lt.s32.totalorder %s18_s13, %s18_s13 }
   0xb   :  { %p99_p3 = scmp.ne.s32.totalorder %s18_s13, %s98_s23  ;;  %p104_p5 = scmp.lt.s32.totalorder %s98_s23, %s98_s23 }
   0xd   :  { %p105_p6 = por %p104_p5, %p103_p4 }
   0xf   :  { %p106_p7 = pnand %p105_p6, %p99_p3 }
  0x11   :  { %109 = shalt.err (!%p106_p7)
}
  0x12   :  { %20 = dma.hbm_to_vmem [thread:$0]  %s223_s0, 64, %s18_s13, [#allocation3]  }
  0x13   :  { %s110_s28 = scalar_lea.hbm %s224_s1, 64 }
  0x14   :  { %p111_p8 = scmp.ne.s32.totalorder %s224_s1, %s110_s28  ;;  %p114_p9 = scmp.lt.u32.totalorder %s110_s28, %s224_s1 }
  0x16   :  { %p116_p10 = pnand %p114_p9, %p111_p8 }
  0x18   :  { %119 = shalt.err (!%p116_p10)
}
  0x19   :  { %s120_s6 = scalar_lea.vmem %s28_s15, 64  ;;  %p125_p12 = scmp.lt.s32.totalorder %s28_s15, %s28_s15 }
  0x1a   :  { %p121_p11 = scmp.ne.s32.totalorder %s28_s15, %s120_s6  ;;  %p126_p13 = scmp.lt.s32.totalorder %s120_s6, %s120_s6 }
  0x1c   :  { %p127_p0 = por %p126_p13, %p125_p12 }
  0x1e   :  { %p128_p1 = pnand %p127_p0, %p121_p11 }
  0x20   :  { %131 = shalt.err (!%p128_p1)
}
  0x21   :  { %30 = dma.hbm_to_vmem [thread:$0]  %s224_s1, 64, %s28_s15, [#allocation6]  }
  0x22   :  { %154 = dma.done.wait [#allocation3], 64  }
  0x23   :  { %155 = vsyncadd [#allocation3], 4294967232 }
  0x24   :  { %156 = dma.done.wait [#allocation6], 64  }
  0x25   :  { %157 = vsyncadd [#allocation6], 4294967232  ;;  %v162_v0 = vmov 0.0   ;;  %v44_v1 = vld [vmem:[#allocation2] sm:$0xf]  ;;  %v57_v7 = vlaneseq  ;;  %s163_s1 = smov [#allocation7]  }
  0x26   :  { %43 = vst [vmem:[#allocation7] sm:$0xf] %v162_v0  ;;  %v45_v2 = vld [vmem:[#allocation5] sm:$0xf]  ;;  %v46_v6 = vld [vmem:[%s225_s2] sm:$0xf] }
  0x27   :  { %v47_v3 = vsub.f32 %v44_v1, %v45_v2  ;;  %v58_v11 = vshrl.u32 %v57_v7, 7  ;;  %s72_s10 = sshll.u32 %s163_s1, 4  ;;  %s73_s10 = int_to_ptr.vmem [resolvable:$true] %s72_s10 }
  0x28   :  { %s132_s11 = scalar_lea.vmem %s73_s10, 64  ;;  %p137_p3 = scmp.lt.s32.totalorder %s73_s10, %s73_s10 }
  0x29   :  { %v48_v4 = vmul.f32 1.442695, %v47_v3  ;;  %vm61_vm0 = vcmp.lt.s32.totalorder %v58_v11, 4  ;;  %p133_p2 = scmp.ne.s32.totalorder %s73_s10, %s132_s11  ;;  %p138_p4 = scmp.lt.s32.totalorder %s132_s11, %s132_s11 }
  0x2b   :  { %86 = vpow2.f32 %v48_v4  ;;  %p139_p5 = por %p138_p4, %p137_p3 }
  0x2d   :  { %v63_v15 = vld [vmem:[#allocation7] sm:$0xf]  ;;  %p140_p6 = pnand %p139_p5, %p133_p2 }
  0x35   :  { %v87_v5 = vpop.eup %86 }
  0x36   :  { %v51_v8 = vmax.f32 %v87_v5, 0.8  ;;  %v50_v9 = vmul.f32 %v87_v5, %v46_v6 }
  0x38   :  { %v52_v10 = vmin.f32 %v51_v8, 1.2 }
  0x3a   :  { %v53_v12 = vmul.f32 %v52_v10, %v46_v6 }
  0x3c   :  { %v54_v13 = vmin.f32 %v50_v9, %v53_v12 }
  0x3e   :  { %v55_v14 = vsub.f32 0.0, %v54_v13 }
  0x40   :  { %v62_v16 = vsel %vm61_vm0, %v55_v14, 0.0 }
  0x41   :  { %v64_v17 = vadd.f32 %v63_v15, %v62_v16 }
  0x43   :  { %65 = vst [vmem:[#allocation7] sm:$0xf] %v64_v17 }
  0x44   :  { %143 = shalt.err (!%p140_p6)
}
  0x45   :  { %s144_s13 = scalar_lea.hbm %s226_s3, 64 }
  0x46   :  { %p145_p7 = scmp.ne.s32.totalorder %s226_s3, %s144_s13  ;;  %p148_p8 = scmp.lt.u32.totalorder %s144_s13, %s226_s3 }
  0x48   :  { %p150_p9 = pnand %p148_p8, %p145_p7 }
  0x4a   :  { %153 = shalt.err (!%p150_p9)
}
  0x4b   :  { %75 = dma.vmem_to_hbm [thread:$0]  %s73_s10, 64, %s226_s3, [#allocation4]  }
  0x4c   :  { %158 = dma.done.wait [#allocation4], 64  }
  0x4d   :  { %159 = vsyncadd [#allocation4], 4294967232 }
  0x4e   :  { %79 = vsyncpa [#allocation3], 1 }
  0x4f   :  { %80 = vsyncpa [#allocation6], 1 }
  0x50   :  { %81 = vsyncpa [#allocation4], 1 }

</bundles_post_ra>
